<compile_context>
chip_gen: v6e
topology: v6e:2x2x1
jax: 0.10.0
libtpu: 0.0.40
codegen_flags: <defaults>
</compile_context>

<pallas_src>
import functools

import jax
import jax.numpy as jnp
from jax.experimental import pallas as pl
from jax.experimental.pallas import tpu as pltpu

LANE = 128
SUB = 8
MAX_TILE_ROWS = 1024        # 1024 * 128 * 4 B = 512 KiB per input buffer
_PALLAS_MIN_N = 4096        # below this, pure-XLA fusion wins (launch + pad overhead)


def _cdiv(a, b):
    return -(-a // b)


def _round_up(a, b):
    return _cdiv(a, b) * b


def _mse_softmax_kernel(pos_ref, neg_ref, out_ref, *, n, n_padded, tile_rows):
    i = pl.program_id(0)
    pos = pos_ref[...].astype(jnp.float32)
    neg = neg_ref[...].astype(jnp.float32)
    # Pairwise softmax prob of `pos` is sigmoid(pos - neg); q = 1 - p, so
    #   loss = p^2 + (q - 1)^2 = 2 * p^2
    # -> a single exp (EUP) and a single divide per element.
    p = 1.0 / (1.0 + jnp.exp(neg - pos))
    loss = 2.0 * p * p
    if n != n_padded:
        # Static (trace-time) check: only emit the mask when a padded tail
        # exists.  Pad lanes may hold garbage after exp; jnp.where selects 0
        # elementwise so NaN/Inf in masked positions cannot propagate.
        row = jax.lax.broadcasted_iota(jnp.int32, (tile_rows, LANE), 0)
        col = jax.lax.broadcasted_iota(jnp.int32, (tile_rows, LANE), 1)
        gidx = (i * tile_rows + row) * LANE + col   # global flat element index
        loss = jnp.where(gidx < n, loss, 0.0)
    # Lane-dense per-tile partial sums (cross-sublane reduce only, XLU slot);
    # the tiny (num_tiles, 1, 128) reduction is finished in the wrapper.
    out_ref[...] = jnp.sum(loss, axis=0, keepdims=True)


def _mse_softmax_pallas_sum(dist_pos, dist_neg):
    n = dist_pos.shape[0]
    rows_needed = _cdiv(n, LANE)
    if rows_needed <= MAX_TILE_ROWS:
        tile_rows = max(SUB, _round_up(rows_needed, SUB))
        num_tiles = 1
    else:
        tile_rows = MAX_TILE_ROWS
        num_tiles = _cdiv(rows_needed, tile_rows)
    rows = num_tiles * tile_rows
    n_padded = rows * LANE
    pad = n_padded - n

    if pad:
        pos2 = jnp.pad(dist_pos, (0, pad)).reshape(rows, LANE)
        neg2 = jnp.pad(dist_neg, (0, pad)).reshape(rows, LANE)
    else:
        # Aligned N: reshape is a free bitcast, no extra HBM copy.
        pos2 = dist_pos.reshape(rows, LANE)
        neg2 = dist_neg.reshape(rows, LANE)

    partials = pl.pallas_call(
        functools.partial(
            _mse_softmax_kernel, n=n, n_padded=n_padded, tile_rows=tile_rows
        ),
        out_shape=jax.ShapeDtypeStruct((num_tiles, 1, LANE), jnp.float32),
        grid=(num_tiles,),
        in_specs=[
            pl.BlockSpec((tile_rows, LANE), lambda i: (i, 0)),
            pl.BlockSpec((tile_rows, LANE), lambda i: (i, 0)),
        ],
        # Leading dim squeezed (None): kernel sees a (1, 128) lane-dense block.
        out_specs=pl.BlockSpec((None, 1, LANE), lambda i: (i, 0, 0)),
        compiler_params=pltpu.CompilerParams(
            dimension_semantics=("parallel",),
        ),
    )(pos2, neg2)
    return jnp.sum(partials)


def mse_softmax_loss(dist_pos, dist_neg, reduction="sum", *, use_pallas=None):
    assert dist_pos.shape == dist_neg.shape and dist_pos.ndim == 1
    n = dist_pos.shape[0]
    if use_pallas is None:
        use_pallas = n >= _PALLAS_MIN_N
    if use_pallas:
        total = _mse_softmax_pallas_sum(dist_pos, dist_neg)
    else:
        # Tiny-N fast path: pure-XLA fusion beats kernel launch + pad/reshape.
        p = jax.nn.sigmoid(
            dist_pos.astype(jnp.float32) - dist_neg.astype(jnp.float32)
        )
        total = jnp.sum(2.0 * p * p)
    if reduction == "sum":
        return total
    return total / jnp.float32(n)


def _reference(dist_pos, dist_neg, reduction="sum"):
    # Pure-JAX mirror of the PyTorch forward.
    stacked = jnp.stack((dist_pos, dist_neg)).T                    # (N, 2)
    sm = jax.nn.softmax(stacked.astype(jnp.float32), axis=1)
    diff = sm - jnp.array([0.0, 1.0], jnp.float32)
    losses = jnp.sum(diff * diff, axis=1)
    return jnp.sum(losses) if reduction == "sum" else jnp.mean(losses)


if __name__ == "__main__":
    key = jax.random.PRNGKey(0)
    k1, k2, k3, k4 = jax.random.split(key, 4)

    # Small case: single (8, 128) tile with a masked padded tail.
    N1 = 200
    dp1 = jax.random.uniform(k1, (N1,), jnp.float32, minval=0.0, maxval=2.0)
    dn1 = jax.random.uniform(k2, (N1,), jnp.float32, minval=0.0, maxval=2.0)

    # Multi-tile case: 3 grid steps, exercises tiling, parallel partial sums
    # and in-kernel masking of the final tile.
    N2 = 300_000
    dp2 = jax.random.uniform(k3, (N2,), jnp.float32, minval=0.0, maxval=2.0)
    dn2 = jax.random.uniform(k4, (N2,), jnp.float32, minval=0.0, maxval=2.0)

    out1_sum = jax.block_until_ready(mse_softmax_loss(dp1, dn1, "sum", use_pallas=True))
    out1_mean = jax.block_until_ready(mse_softmax_loss(dp1, dn1, "mean", use_pallas=True))
    out2_sum = jax.block_until_ready(mse_softmax_loss(dp2, dn2, "sum", use_pallas=True))

    ref1_sum = _reference(dp1, dn1, "sum")
    ref1_mean = _reference(dp1, dn1, "mean")
    ref2_sum = _reference(dp2, dn2, "sum")

    assert jnp.allclose(out1_sum, ref1_sum, rtol=1e-5, atol=1e-5), (out1_sum, ref1_sum)
    assert jnp.allclose(out1_mean, ref1_mean, rtol=1e-5, atol=1e-5), (out1_mean, ref1_mean)
    assert jnp.allclose(out2_sum, ref2_sum, rtol=1e-4), (out2_sum, ref2_sum)

    print("KERNEL_OK")
</pallas_src>

<mosaic_0001>
module attributes {stable_mosaic.version = 11 : i64} {
  func.func @_mse_softmax_kernel(%arg0: i32, %arg1: memref<8x128xf32, #tpu.memory_space<vmem>>, %arg2: memref<8x128xf32, #tpu.memory_space<vmem>>, %arg3: memref<1x1x128xf32, #tpu.memory_space<vmem>>) attributes {dimension_semantics = [#tpu.dimension_semantics<parallel>], iteration_bounds = array<i64: 1>, scalar_prefetch = 0 : i64, scratch_operands = 0 : i64, tpu.core_type = #tpu.core_type<tc>, window_params = [{transform_indices = @transform_0, window_bounds = array<i64: 8, 128>}, {transform_indices = @transform_1, window_bounds = array<i64: 8, 128>}, {transform_indices = @transform_2, window_bounds = array<i64: 1, 1, 128>}]} {
    %c0 = arith.constant 0 : index
    %c0_0 = arith.constant 0 : index
    %0 = vector.load %arg1[%c0, %c0_0] : memref<8x128xf32, #tpu.memory_space<vmem>>, vector<8x128xf32>
    %c0_1 = arith.constant 0 : index
    %c0_2 = arith.constant 0 : index
    %1 = vector.load %arg2[%c0_1, %c0_2] : memref<8x128xf32, #tpu.memory_space<vmem>>, vector<8x128xf32>
    %2 = arith.subf %1, %0 : vector<8x128xf32>
    %3 = math.exp %2 : vector<8x128xf32>
    %cst = arith.constant 1.000000e+00 : f32
    %4 = vector.broadcast %cst : f32 to vector<8x128xf32>
    %5 = arith.addf %4, %3 : vector<8x128xf32>
    %cst_3 = arith.constant 1.000000e+00 : f32
    %6 = vector.broadcast %cst_3 : f32 to vector<8x128xf32>
    %7 = arith.divf %6, %5 : vector<8x128xf32>
    %cst_4 = arith.constant 2.000000e+00 : f32
    %8 = vector.broadcast %cst_4 : f32 to vector<8x128xf32>
    %9 = arith.mulf %8, %7 : vector<8x128xf32>
    %10 = arith.mulf %9, %7 : vector<8x128xf32>
    %11 = tpu.iota {dimensions = array<i32: 0>} : vector<8x128xi32>
    %12 = tpu.iota {dimensions = array<i32: 1>} : vector<8x128xi32>
    %c8_i32 = arith.constant 8 : i32
    %13 = arith.muli %arg0, %c8_i32 : i32
    %14 = vector.broadcast %13 : i32 to vector<8x128xi32>
    %15 = arith.addi %14, %11 : vector<8x128xi32>
    %c128_i32 = arith.constant 128 : i32
    %16 = vector.broadcast %c128_i32 : i32 to vector<8x128xi32>
    %17 = arith.muli %15, %16 : vector<8x128xi32>
    %18 = arith.addi %17, %12 : vector<8x128xi32>
    %c200_i32 = arith.constant 200 : i32
    %19 = vector.broadcast %c200_i32 : i32 to vector<8x128xi32>
    %20 = arith.cmpi slt, %18, %19 : vector<8x128xi32>
    %cst_5 = arith.constant 0.000000e+00 : f32
    %21 = vector.broadcast %cst_5 : f32 to vector<8x128xf32>
    %22 = arith.select %20, %10, %21 : vector<8x128xi1>, vector<8x128xf32>
    %cst_6 = arith.constant dense<0.000000e+00> : vector<128xf32>
    %23 = vector.multi_reduction <add>, %22, %cst_6 [0] : vector<8x128xf32> to vector<128xf32>
    %24 = vector.shape_cast %23 : vector<128xf32> to vector<1x128xf32>
    %c0_7 = arith.constant 0 : index
    %c0_8 = arith.constant 0 : index
    %c0_9 = arith.constant 0 : index
    %25 = vector.load %arg3[%c0_7, %c0_8, %c0_9] : memref<1x1x128xf32, #tpu.memory_space<vmem>>, vector<1x1x128xf32>
    %26 = vector.shape_cast %25 : vector<1x1x128xf32> to vector<1x128xf32>
    %27 = vector.shape_cast %24 : vector<1x128xf32> to vector<1x1x128xf32>
    tpu.vector_store %arg3[%c0_7, %c0_8, %c0_9], %27 {strides = array<i32>} : memref<1x1x128xf32, #tpu.memory_space<vmem>>, vector<1x1x128xf32>,
    return
  }
  func.func @transform_0(%arg0: i32) -> (i32, i32) {
    %c0_i32 = arith.constant 0 : i32
    %c0_i32_0 = arith.constant 0 : i32
    return %arg0, %c0_i32 : i32, i32
  }
  func.func @transform_1(%arg0: i32) -> (i32, i32) {
    %c0_i32 = arith.constant 0 : i32
    %c0_i32_0 = arith.constant 0 : i32
    return %arg0, %c0_i32 : i32, i32
  }
  func.func @transform_2(%arg0: i32) -> (i32, i32, i32) {
    %c0_i32 = arith.constant 0 : i32
    %c0_i32_0 = arith.constant 0 : i32
    %c0_i32_1 = arith.constant 0 : i32
    return %arg0, %c0_i32, %c0_i32_0 : i32, i32, i32
  }
}

</mosaic_0001>

<bundles_post_ra>
// kernel: tpu_custom_call.1
= control target key start
LH: loop header
LB: loop body
LE: loop exit
PB: predicated region body
PF: predicated region fallthrough
CT: control target
= control target key end

     0   :  { %7 = vsyncpa [#allocation3], 0  ;;  %s180_s0 = inlined_call_operand.hbm [shape: f32[8,128], index: 0, kind: input, shape index: {}]   ;;  %s181_s1 = inlined_call_operand.hbm [shape: f32[8,128], index: 1, kind: input, shape index: {}]   ;;  %s182_s2 = inlined_call_operand.hbm [shape: f32[1,1,128], index: 2, kind: output, shape index: {}]  }
   0x1   :  { %8 = vsyncpa [#allocation6], 0 }
   0x2   :  { %9 = vsyncpa [#allocation4], 0  ;;  %s153_s9 = smov [#allocation2]   ;;  %s154_s11 = smov [#allocation5]  }
   0x3   :  { %s16_s10 = sshll.u32 %s153_s9, 4  ;;  %s26_s12 = sshll.u32 %s154_s11, 4  ;;  %s17_s10 = int_to_ptr.vmem [resolvable:$true] %s16_s10  ;;  %s27_s12 = int_to_ptr.vmem [resolvable:$true] %s26_s12 }
   0x4   :  { %s95_s13 = scalar_lea.vmem %s17_s10, 128  ;;  %p100_p1 = scmp.lt.s32.totalorder %s17_s10, %s17_s10 }
   0x5   :  { %p96_p0 = scmp.ne.s32.totalorder %s17_s10, %s95_s13  ;;  %p101_p2 = scmp.lt.s32.totalorder %s95_s13, %s95_s13 }
   0x7   :  { %p102_p3 = por %p101_p2, %p100_p1 }
   0x9   :  { %p103_p4 = pnand %p102_p3, %p96_p0 }
   0xb   :  { %106 = shalt.err (!%p103_p4)
}
   0xc   :  { %19 = dma.hbm_to_vmem [thread:$0]  %s180_s0, 128, %s17_s10, [#allocation3]  }
   0xd   :  { %s115_s16 = scalar_lea.vmem %s27_s12, 128  ;;  %p120_p6 = scmp.lt.s32.totalorder %s27_s12, %s27_s12 }
   0xe   :  { %p116_p5 = scmp.ne.s32.totalorder %s27_s12, %s115_s16  ;;  %p121_p7 = scmp.lt.s32.totalorder %s115_s16, %s115_s16 }
  0x10   :  { %p122_p8 = por %p121_p7, %p120_p6 }
  0x12   :  { %p123_p9 = pnand %p122_p8, %p116_p5 }
  0x14   :  { %126 = shalt.err (!%p123_p9)
}
  0x15   :  { %29 = dma.hbm_to_vmem [thread:$0]  %s181_s1, 128, %s27_s12, [#allocation6]  }
  0x16   :  { %147 = dma.done.wait [#allocation3], 128  }
  0x17   :  { %148 = vsyncadd [#allocation3], 4294967168 }
  0x18   :  { %149 = dma.done.wait [#allocation6], 128  }
  0x19   :  { %150 = vsyncadd [#allocation6], 4294967168  ;;  %v36_v0 = vld [vmem:[#allocation2] sm:$0xff]  ;;  %v37_v1 = vld [vmem:[#allocation5] sm:$0xff]  ;;  %v46_v6 = vlaneseq  ;;  %s155_s0 = smov [#allocation7]  }
  0x1a   :  { %v38_v2 = vsub.f32 %v37_v1, %v36_v0  ;;  %s70_s1 = sshll.u32 %s155_s0, 4  ;;  %s71_s1 = int_to_ptr.vmem [resolvable:$true] %s70_s1 }
  0x1b   :  { %v47_v7 = vshrl.u32 %v46_v6, 7  ;;  %v49_v8 = vand.u32 127, %v46_v6  ;;  %s127_s19 = scalar_lea.vmem %s71_s1, 16  ;;  %s131_s20 = scalar_lea.vmem %s71_s1, 32 }
  0x1c   :  { %v39_v3 = vmul.f32 1.442695, %v38_v2  ;;  %p128_p10 = scmp.ne.s32.totalorder %s71_s1, %s127_s19  ;;  %p132_p11 = scmp.lt.s32.totalorder %s71_s1, %s71_s1 }
  0x1d   :  { %v53_v9 = vmul.u32 128, %v47_v7  ;;  %p133_p12 = scmp.lt.s32.totalorder %s131_s20, %s127_s19 }
  0x1e   :  { %83 = vpow2.f32 %v39_v3 }
  0x1f   :  { %v54_v10 = vadd.s32 %v53_v9, %v49_v8  ;;  %p134_p13 = por %p133_p12, %p132_p11 }
  0x21   :  { %vm55_vm0 = vcmp.lt.s32.totalorder %v54_v10, 200  ;;  %p135_p0 = pnand %p134_p13, %p128_p10 }
  0x2b   :  { %v84_v4 = vpop.eup %83 }
  0x2c   :  { %v41_v5 = vadd.f32 1.0, %v84_v4 }
  0x2e   :  { %85 = vrcp.f32 %v41_v5 }
  0x3b   :  { %v86_v11 = vpop.eup %85 }
  0x3c   :  { %v44_v12 = vmul.f32 2.0, %v86_v11 }
  0x3e   :  { %v45_v13 = vmul.f32 %v86_v11, %v44_v12 }
  0x40   :  { %v56_v14 = vsel %vm55_vm0, %v45_v13, 0.0 }
  0x41   :  { %v57_v15 = vrot.slane %v56_v14, 4 }
  0x43   :  { %v58_v16 = vadd.f32 %v57_v15, %v56_v14 }
  0x45   :  { %v59_v17 = vrot.slane %v58_v16, 2 }
  0x47   :  { %v60_v18 = vadd.f32 %v59_v17, %v58_v16 }
  0x49   :  { %v61_v19 = vrot.slane %v60_v18, 1 }
  0x4b   :  { %v62_v20 = vadd.f32 %v61_v19, %v60_v18 }
  0x4d   :  { %63 = vst [vmem:[#allocation7] sm:$0x1] %v62_v20 }
  0x4e   :  { %138 = shalt.err (!%p135_p0)
}
  0x4f   :  { %73 = dma.vmem_to_hbm [thread:$0]  %s71_s1, 16, %s182_s2, [#allocation4]  }
  0x50   :  { %151 = dma.done.wait [#allocation4], 16  }
  0x51   :  { %152 = vsyncadd [#allocation4], 4294967280 }
  0x52   :  { %77 = vsyncpa [#allocation3], 1 }
  0x53   :  { %78 = vsyncpa [#allocation6], 1 }
  0x54   :  { %79 = vsyncpa [#allocation4], 1 }

</bundles_post_ra>
